<compile_context>
chip_gen: v6e
topology: v6e:2x2x1
jax: 0.10.0
libtpu: 0.0.40
codegen_flags: <defaults>
</compile_context>

<pallas_src>
import functools

import jax
import jax.numpy as jnp
from jax import lax
from jax.experimental import pallas as pl
from jax.experimental.pallas import tpu as pltpu

COEFF = 3.0
N_POWER_ITERATIONS = 1
BN_EPS = 1e-5


def _round_up(x, m):
    return (x + m - 1) // m * m


# ----------------------------------------------------------------------------- Pallas kernel
def _fused_matmul_bn_kernel(a_ref, w_ref, shift_ref, *rest, apply_relu, has_residual,
                            multi_k):
    """out = maybe_relu(A(bf16) @ W(bf16) + shift [+ residual]); f32 accumulation."""
    if has_residual:
        res_ref, *rest = rest
    else:
        res_ref = None

    if not multi_k:
        # Whole K resident: write the result directly (no scratch round-trip).
        (o_ref,) = rest
        out = jnp.dot(a_ref[...], w_ref[...], preferred_element_type=jnp.float32)
        out = out + shift_ref[...]
        if has_residual:
            out = out + res_ref[...].astype(jnp.float32)
        if apply_relu:
            out = jnp.maximum(out, 0.0)
        o_ref[...] = out.astype(o_ref.dtype)
        return

    # K-reduction grid axis: f32 VMEM accumulator, init/epilogue gated with pl.when.
    o_ref, acc_ref = rest
    k = pl.program_id(2)

    @pl.when(k == 0)
    def _init():
        acc_ref[...] = jnp.zeros_like(acc_ref)

    acc_ref[...] += jnp.dot(a_ref[...], w_ref[...], preferred_element_type=jnp.float32)

    @pl.when(k == pl.num_programs(2) - 1)
    def _epilogue():
        out = acc_ref[...] + shift_ref[...]
        if has_residual:
            out = out + res_ref[...].astype(jnp.float32)
        if apply_relu:
            out = jnp.maximum(out, 0.0)
        o_ref[...] = out.astype(o_ref.dtype)


def fused_conv_bn(patches, w_mat, shift, residual=None, *, apply_relu,
                  out_dtype=jnp.float32, tm=256, tk_max=2048):
    """out = maybe_relu(patches @ w_mat + shift [+ residual]).

    patches: [M, K] (any float dtype), w_mat: [K, C] (BN scale already folded in),
    shift: [C], residual: [M, C] or None.  C must be a multiple of 128 (pre-padded).
    """
    M, K = patches.shape
    Kw, C = w_mat.shape
    assert Kw == K
    assert C % 128 == 0, "pad output channels to a multiple of 128 before calling"

    in_dtype = jnp.bfloat16                       # MXU-native inputs, f32 accumulation
    a = patches.astype(in_dtype)
    w = w_mat.astype(in_dtype)
    shift2 = shift.reshape(1, C).astype(jnp.float32)
    res = residual.astype(in_dtype) if residual is not None else None

    # ---- M tiling: pad M to the tile; prefer >=2 parallel M steps (v7x has 2 TensorCores).
    tm_eff = min(tm, _round_up(M, 16))
    if _round_up(M, tm_eff) == tm_eff and tm_eff % 32 == 0:
        tm_eff //= 2
    M_pad = _round_up(M, tm_eff)
    if M_pad != M:
        a = jnp.pad(a, ((0, M_pad - M), (0, 0)))
        if res is not None:
            res = jnp.pad(res, ((0, M_pad - M), (0, 0)))

    # ---- K tiling: keep K resident when small, else lane-aligned K chunks + f32 accumulator.
    if K <= tk_max:
        K_pad = _round_up(K, 16)                  # align bf16 sublane packing
        tk = K_pad
    else:
        K_pad = _round_up(K, 128)
        tk = 128
        for cand in range(tk_max, 127, -128):
            if K_pad % cand == 0:
                tk = cand
                break
    if K_pad != K:
        a = jnp.pad(a, ((0, 0), (0, K_pad - K)))
        w = jnp.pad(w, ((0, K_pad - K), (0, 0)))

    # ---- C tiling: lane-dense output blocks (multiple of 128).
    tc = C if C <= 512 else (256 if C % 256 == 0 else 128)

    nm, nc, nk = M_pad // tm_eff, C // tc, K_pad // tk
    multi_k = nk > 1

    # ---- explicit VMEM budget (double-buffered inputs/outputs + optional f32 accumulator),
    #      capped at 64 MiB so the same config also fits v7x physical VMEM.
    in_bytes, out_bytes = 2, jnp.dtype(out_dtype).itemsize
    per_step = (tm_eff * tk * in_bytes + tk * tc * in_bytes + tc * 4
                + (tm_eff * tc * in_bytes if res is not None else 0)
                + tm_eff * tc * out_bytes)
    acc_bytes = tm_eff * tc * 4 if multi_k else 0
    vmem_limit = int(min(max(2 * (2 * per_step) + acc_bytes, 32 << 20), 64 << 20))

    bytes_accessed = (M_pad * K_pad * in_bytes + K_pad * C * in_bytes + C * 4
                      + (M_pad * C * in_bytes if res is not None else 0)
                      + M_pad * C * out_bytes)
    cost = pl.CostEstimate(flops=2 * M_pad * K_pad * C, transcendentals=0,
                           bytes_accessed=bytes_accessed)

    if multi_k:
        grid = (nm, nc, nk)
        a_spec = pl.BlockSpec((tm_eff, tk), lambda m, c, k: (m, k))   # patch tile
        w_spec = pl.BlockSpec((tk, tc), lambda m, c, k: (k, c))       # weight (BN folded)
        s_spec = pl.BlockSpec((1, tc), lambda m, c, k: (0, c))        # bn shift
        r_spec = pl.BlockSpec((tm_eff, tc), lambda m, c, k: (m, c))   # residual
        o_spec = pl.BlockSpec((tm_eff, tc), lambda m, c, k: (m, c))
        scratch = [pltpu.VMEM((tm_eff, tc), jnp.float32)]
        dims = ("parallel", "parallel", "arbitrary")
    else:
        grid = (nm, nc)
        a_spec = pl.BlockSpec((tm_eff, tk), lambda m, c: (m, 0))
        w_spec = pl.BlockSpec((tk, tc), lambda m, c: (0, c))
        s_spec = pl.BlockSpec((1, tc), lambda m, c: (0, c))
        r_spec = pl.BlockSpec((tm_eff, tc), lambda m, c: (m, c))
        o_spec = pl.BlockSpec((tm_eff, tc), lambda m, c: (m, c))
        scratch = []
        dims = ("parallel", "parallel")

    in_specs = [a_spec, w_spec, s_spec]
    operands = [a, w, shift2]
    if res is not None:
        in_specs.append(r_spec)
        operands.append(res)

    kernel = functools.partial(_fused_matmul_bn_kernel, apply_relu=apply_relu,
                               has_residual=res is not None, multi_k=multi_k)
    out = pl.pallas_call(
        kernel,
        out_shape=jax.ShapeDtypeStruct((M_pad, C), out_dtype),
        grid_spec=pltpu.PrefetchScalarGridSpec(
            num_scalar_prefetch=0,
            grid=grid,
            in_specs=in_specs,
            out_specs=o_spec,
            scratch_shapes=scratch),
        compiler_params=pltpu.CompilerParams(
            dimension_semantics=dims,
            vmem_limit_bytes=vmem_limit),
        cost_estimate=cost,
    )(*operands)
    return out[:M] if M_pad != M else out


# ----------------------------------------------------------------------------- glue: im2col
def extract_patches_3x3(x_nhwc, stride):
    """3x3 conv, padding=1. Returns ([N*Ho*Wo, 9*C], (N, Ho, Wo)); dtype follows input."""
    N, H, W, C = x_nhwc.shape
    pad = 1
    Ho = (H + 2 * pad - 3) // stride + 1
    Wo = (W + 2 * pad - 3) // stride + 1
    xp = jnp.pad(x_nhwc, ((0, 0), (pad, pad), (pad, pad), (0, 0)))
    cols = []
    for di in range(3):
        for dj in range(3):
            sl = xp[:, di:di + (Ho - 1) * stride + 1:stride,
                       dj:dj + (Wo - 1) * stride + 1:stride, :]
            cols.append(sl)
    patches = jnp.concatenate(cols, axis=-1)            # (N, Ho, Wo, 9*C), order (kh, kw, cin)
    return patches.reshape(N * Ho * Wo, 9 * C), (N, Ho, Wo)


# ----------------------------------------------------------------------------- glue: spectral norm / BN fold
def _l2norm(v):
    return v / (jnp.linalg.norm(v) + 1e-12)


def spectral_normalize(w_hwio, key, coeff=None, n_iter=N_POWER_ITERATIONS):
    """coeff=None -> torch spectral_norm (divide by sigma);
    coeff given -> spectral_norm_fc (divide by max(1, sigma/coeff))."""
    kh, kw, cin, cout = w_hwio.shape
    wm = jnp.transpose(w_hwio, (3, 0, 1, 2)).reshape(cout, kh * kw * cin)
    u = _l2norm(jax.random.normal(key, (cout,), jnp.float32))
    v = None
    for _ in range(n_iter):
        v = _l2norm(wm.T @ u)
        u = _l2norm(wm @ v)
    sigma = u @ (wm @ v)
    factor = sigma if coeff is None else jnp.maximum(1.0, sigma / coeff)
    return w_hwio / factor


def bn_fold(gamma, beta, running_mean, running_var, coeff=COEFF, eps=BN_EPS):
    """SpectralBatchNorm2d (eval mode): clamp Lipschitz constant to coeff, fold to scale/shift."""
    lipschitz = jnp.max(jnp.abs(gamma) / jnp.sqrt(running_var + eps))
    factor = jnp.maximum(lipschitz / coeff, 1.0)
    gamma_eff = gamma / factor
    scale = gamma_eff / jnp.sqrt(running_var + eps)
    shift = beta - running_mean * scale
    return scale, shift


# ----------------------------------------------------------------------------- BasicBlock
def make_basic_block_params(key, in_planes, planes, stride):
    ks = jax.random.split(key, 12)
    p = {}
    p["w1"] = spectral_normalize(
        0.2 * jax.random.normal(ks[0], (3, 3, in_planes, planes), jnp.float32), ks[1], coeff=None)
    p["w2"] = spectral_normalize(
        0.2 * jax.random.normal(ks[2], (3, 3, planes, planes), jnp.float32), ks[3], coeff=None)
    p["bn1"] = bn_fold(
        1.0 + 0.1 * jax.random.normal(ks[4], (planes,), jnp.float32),
        0.1 * jax.random.normal(ks[5], (planes,), jnp.float32),
        0.05 * jax.random.normal(ks[6], (planes,), jnp.float32),
        1.0 + 0.1 * jax.nn.softplus(jax.random.normal(ks[7], (planes,), jnp.float32)))
    p["bn2"] = bn_fold(
        1.0 + 0.1 * jax.random.normal(ks[8], (planes,), jnp.float32),
        0.1 * jax.random.normal(ks[9], (planes,), jnp.float32),
        0.05 * jax.random.normal(ks[10], (planes,), jnp.float32),
        1.0 + 0.1 * jax.nn.softplus(jax.random.normal(ks[11], (planes,), jnp.float32)))
    p["has_shortcut"] = (stride != 1) or (in_planes != planes)
    if p["has_shortcut"]:
        ks2 = jax.random.split(jax.random.fold_in(key, 99), 7)
        p["ws"] = spectral_normalize(
            0.2 * jax.random.normal(ks2[0], (1, 1, in_planes, planes), jnp.float32),
            ks2[1], coeff=COEFF)   # spectral_norm_fc for kernel_size == 1
        p["bns"] = bn_fold(
            1.0 + 0.1 * jax.random.normal(ks2[2], (planes,), jnp.float32),
            0.1 * jax.random.normal(ks2[3], (planes,), jnp.float32),
            0.05 * jax.random.normal(ks2[4], (planes,), jnp.float32),
            1.0 + 0.1 * jax.nn.softplus(jax.random.normal(ks2[5], (planes,), jnp.float32)))
    return p


def basic_block_forward(x_nchw, params, stride):
    x = jnp.transpose(x_nchw, (0, 2, 3, 1)).astype(jnp.float32)   # NCHW -> NHWC
    N, H, W, Cin = x.shape
    planes = params["w1"].shape[-1]
    C_pad = _round_up(planes, 128)                                # lane-dense padded channels

    # ---- conv1 + bn1 + relu  (bn scale folded into weight columns, no residual stream)
    p1, (_, Ho, Wo) = extract_patches_3x3(x, stride)
    s1, b1 = params["bn1"]
    w1 = params["w1"] * s1[None, None, None, :]
    w1_mat = jnp.pad(w1, ((0, 0), (0, 0), (0, 0), (0, C_pad - planes))).reshape(9 * Cin, C_pad)
    b1_pad = jnp.pad(b1, (0, C_pad - planes))
    out1 = fused_conv_bn(p1, w1_mat, b1_pad, apply_relu=True, out_dtype=jnp.bfloat16)
    # Padded channels of out1 are exactly 0; drop them before conv2 so conv2's reduction
    # dimension is 9*planes (not 9*C_pad).
    out1_nhwc = out1.reshape(N, Ho, Wo, C_pad)[..., :planes]

    # ---- shortcut (1x1 conv + bn when stride!=1 or channel change, else identity), bf16
    if params["has_shortcut"]:
        xs = x[:, ::stride, ::stride, :].reshape(N * Ho * Wo, Cin)   # 1x1 conv, pad 0
        ss, bs = params["bns"]
        ws = params["ws"] * ss[None, None, None, :]
        ws_mat = jnp.pad(ws, ((0, 0), (0, 0), (0, 0), (0, C_pad - planes))).reshape(Cin, C_pad)
        bs_pad = jnp.pad(bs, (0, C_pad - planes))
        sc = fused_conv_bn(xs, ws_mat, bs_pad, apply_relu=False, out_dtype=jnp.bfloat16)
    else:
        sc = jnp.pad(x, ((0, 0), (0, 0), (0, 0), (0, C_pad - Cin))).reshape(
            N * Ho * Wo, C_pad).astype(jnp.bfloat16)

    # ---- conv2 + bn2 + residual add + relu (fused)
    p2, _ = extract_patches_3x3(out1_nhwc, 1)                     # bf16 patches, K = 9*planes
    s2, b2 = params["bn2"]
    w2 = params["w2"] * s2[None, None, None, :]
    w2_mat = jnp.pad(w2, ((0, 0), (0, 0), (0, 0), (0, C_pad - planes))).reshape(
        9 * planes, C_pad)
    b2_pad = jnp.pad(b2, (0, C_pad - planes))
    out2 = fused_conv_bn(p2, w2_mat, b2_pad, residual=sc, apply_relu=True,
                         out_dtype=jnp.float32)

    out_nhwc = out2.reshape(N, Ho, Wo, C_pad)[..., :planes]
    return jnp.transpose(out_nhwc, (0, 3, 1, 2))                  # back to NCHW


# ----------------------------------------------------------------------------- pure-JAX reference
def reference_forward(x_nchw, params, stride):
    x = jnp.transpose(x_nchw, (0, 2, 3, 1)).astype(jnp.float32)

    def conv(inp, w_hwio, s, pad):
        return lax.conv_general_dilated(inp, w_hwio, (s, s), [(pad, pad), (pad, pad)],
                                        dimension_numbers=("NHWC", "HWIO", "NHWC"))

    s1, b1 = params["bn1"]
    o = jnp.maximum(conv(x, params["w1"], stride, 1) * s1 + b1, 0.0)
    s2, b2 = params["bn2"]
    o2 = conv(o, params["w2"], 1, 1) * s2 + b2
    if params["has_shortcut"]:
        ss, bs = params["bns"]
        sc = conv(x, params["ws"], stride, 0) * ss + bs
    else:
        sc = x
    out = jnp.maximum(o2 + sc, 0.0)
    return jnp.transpose(out, (0, 3, 1, 2))


# ----------------------------------------------------------------------------- main
if __name__ == "__main__":
    key = jax.random.PRNGKey(0)
    kx, kp = jax.random.split(key)

    N, in_planes, H, W = 2, 4, 16, 16
    planes, stride = 8, 2   # exercises the conv1x1 + bn shortcut path

    x = jax.random.normal(kx, (N, in_planes, H, W), jnp.float32)   # NCHW, like PyTorch
    params = make_basic_block_params(kp, in_planes, planes, stride)

    out = basic_block_forward(x, params, stride)
    out = jax.block_until_ready(out)

    ref = jax.block_until_ready(reference_forward(x, params, stride))
    assert out.shape == (N, planes, H // stride, W // stride), out.shape
    # bf16 MXU inputs + bf16 inter-conv intermediate vs. an fp32 reference -> bf16-level tolerance.
    assert jnp.allclose(out, ref, atol=5e-2, rtol=5e-2), float(jnp.max(jnp.abs(out - ref)))

    print("KERNEL_OK")
</pallas_src>

<mosaic_0001>
module attributes {stable_mosaic.version = 11 : i64} {
  func.func @_fused_matmul_bn_kernel(%arg0: i32, %arg1: i32, %arg2: memref<64x48xbf16, #tpu.memory_space<vmem>>, %arg3: memref<48x128xbf16, #tpu.memory_space<vmem>>, %arg4: memref<1x128xf32, #tpu.memory_space<vmem>>, %arg5: memref<64x128xbf16, #tpu.memory_space<vmem>>) attributes {dimension_semantics = [#tpu.dimension_semantics<parallel>, #tpu.dimension_semantics<parallel>], iteration_bounds = array<i64: 2, 1>, scalar_prefetch = 0 : i64, scratch_operands = 0 : i64, tpu.core_type = #tpu.core_type<tc>, window_params = [{transform_indices = @transform_0, window_bounds = array<i64: 64, 48>}, {transform_indices = @transform_1, window_bounds = array<i64: 48, 128>}, {transform_indices = @transform_2, window_bounds = array<i64: 1, 128>}, {transform_indices = @transform_3, window_bounds = array<i64: 64, 128>}]} {
    %c0 = arith.constant 0 : index
    %c0_0 = arith.constant 0 : index
    %0 = vector.load %arg2[%c0, %c0_0] : memref<64x48xbf16, #tpu.memory_space<vmem>>, vector<64x48xbf16>
    %c0_1 = arith.constant 0 : index
    %c0_2 = arith.constant 0 : index
    %1 = vector.load %arg3[%c0_1, %c0_2] : memref<48x128xbf16, #tpu.memory_space<vmem>>, vector<48x128xbf16>
    %cst = arith.constant dense<0.000000e+00> : vector<64x128xf32>
    %2 = tpu.matmul %0, %1, %cst {dimension_numbers = #tpu.dot_dimension_numbers<[1], [0], [0], [1], [0, 0, 1, 1], [], []>} : vector<64x48xbf16>, vector<48x128xbf16>, vector<64x128xf32> -> vector<64x128xf32>
    %c0_3 = arith.constant 0 : index
    %c0_4 = arith.constant 0 : index
    %3 = vector.load %arg4[%c0_3, %c0_4] : memref<1x128xf32, #tpu.memory_space<vmem>>, vector<1x128xf32>
    %4 = vector.broadcast %3 : vector<1x128xf32> to vector<64x128xf32>
    %5 = arith.addf %2, %4 : vector<64x128xf32>
    %cst_5 = arith.constant 0.000000e+00 : f32
    %6 = vector.broadcast %cst_5 : f32 to vector<64x128xf32>
    %7 = arith.maximumf %5, %6 : vector<64x128xf32>
    %8 = arith.truncf %7 : vector<64x128xf32> to vector<64x128xbf16>
    %c0_6 = arith.constant 0 : index
    %c0_7 = arith.constant 0 : index
    %9 = vector.load %arg5[%c0_6, %c0_7] : memref<64x128xbf16, #tpu.memory_space<vmem>>, vector<64x128xbf16>
    tpu.vector_store %arg5[%c0_6, %c0_7], %8 {strides = array<i32>} : memref<64x128xbf16, #tpu.memory_space<vmem>>, vector<64x128xbf16>,
    return
  }
  func.func @transform_0(%arg0: i32, %arg1: i32) -> (i32, i32) {
    %c0_i32 = arith.constant 0 : i32
    %c0_i32_0 = arith.constant 0 : i32
    return %arg0, %c0_i32 : i32, i32
  }
  func.func @transform_1(%arg0: i32, %arg1: i32) -> (i32, i32) {
    %c0_i32 = arith.constant 0 : i32
    %c0_i32_0 = arith.constant 0 : i32
    return %c0_i32, %arg1 : i32, i32
  }
  func.func @transform_2(%arg0: i32, %arg1: i32) -> (i32, i32) {
    %c0_i32 = arith.constant 0 : i32
    %c0_i32_0 = arith.constant 0 : i32
    return %c0_i32, %arg1 : i32, i32
  }
  func.func @transform_3(%arg0: i32, %arg1: i32) -> (i32, i32) {
    %c0_i32 = arith.constant 0 : i32
    return %arg0, %arg1 : i32, i32
  }
}

</mosaic_0001>

<bundles_post_ra>
// kernel: tpu_custom_call.1
= control target key start
LH: loop header
LB: loop body
LE: loop exit
PB: predicated region body
PF: predicated region fallthrough
CT: control target
= control target key end

     0   :  { %8 = vsyncpa [#allocation3], 0  ;;  %s905_s0 = inlined_call_operand.vmem [shape: bf16[128,48], index: 0, kind: input, shape index: {}]   ;;  %s906_s1 = inlined_call_operand.vmem [shape: bf16[48,128], index: 1, kind: input, shape index: {}]   ;;  %s907_s2 = inlined_call_operand.vmem [shape: f32[1,128], index: 2, kind: input, shape index: {}]   ;;  %s908_s3 = inlined_call_operand.hbm [shape: bf16[128,128], index: 3, kind: output, shape index: {}]  }
   0x1   :  { %10 = vsyncpa [#allocation3 + $0x1], 0  ;;  %s776_s12 = smov 0   ;;  %s778_s13 = smov 0  }
   0x2   :  { %s780_s14 = smov 0   ;;  %s782_s15 = smov 0  }
   0x3   :  { %s784_s16 = smov 0   ;;  %s786_s17 = smov 0  }
   0x4 LB: > { %s517_s18 = sadd.s32 4294967295, %s751_s17   ;;  %s518_s19 = sadd.s32 4294967294, %s751_s17   ;;  %s751_s17 = sphi %s786_s17, %s16_s17   ;;  %s747_s16 = sphi %s784_s16, %s915_s16   ;;  %s743_s15 = sphi %s782_s15, %s914_s15   ;;  %s739_s14 = sphi %s780_s14, %s913_s14   ;;  %s735_s13 = sphi %s778_s13, %s912_s13   ;;  %s731_s12 = sphi %s776_s12, %s911_s12  }
   0x5   : > { %s28_s20 = sadd.s32 1, %s747_s16  ;;  %s115_s21 = sadd.s32 1, %s739_s14 }
   0x6   : > { %p30_p0 = scmp.ge.s32.totalorder %s28_s20, 2  ;;  %p125_p1 = scmp.ne.s32.totalorder %s739_s14, %s735_s13 }
   0x7   : > { %p126_p2 = scmp.eq.s32.totalorder %s517_s18, 1  ;;  %p131_p3 = scmp.ne.s32.totalorder %s735_s13, %s731_s12 }
   0x8   : > { %s917_s20 = smov (%p30_p0, %s28_s20), 0  ;;  %p132_p5 = scmp.eq.s32.totalorder %s518_s19, 1 }
   0x9   : > { %p816_p4 = por %p126_p2, %p125_p1  ;;  %s110_s23 = ssub.s32 %s747_s16, %s917_s20 }
   0xa   : > { %p523_p6 = scmp.ge.s32.totalorder %s751_s17, 1  ;;  %p113_p7 = scmp.eq.s32.totalorder %s110_s23, 0 }
   0xb   : > { %p823_p8 = por %p132_p5, %p131_p3  ;;  %p172_p9 = scmp.lt.s32.totalorder %s751_s17, 3 }
   0xc   : > { %s829_s25 = scalar_select %p113_p7, %s739_s14, %s115_s21  }
   0xd   : > { %p173_p10 = pnand %p523_p6, %p172_p9 }
   0xe   : > { %s525_s28 = sshll.u32 (!%p173_p10), %s743_s15, 3  ;;  %s200_s10 = sand.u32 (!%p173_p10), 1, %s735_s13  }
   0xf   : > { %176 = sbr.rel (%p173_p10) target bundleno = 252 (0xfc), region = 32  ;;  %p204_p11 = scmp.lt.s32.totalorder (!%p173_p10), %s525_s28, 15 }
  0x10   : > { %s524_s19 = sshll.u32 (!%p173_p10), %s200_s10, 5  ;;  %s560_s26 = sshll.u32 (!%p173_p10), %s743_s15, 9 }
  0x11   : > { %s202_s21 = scalar_lea.vmem (!%p173_p10), [#allocation2], %s524_s19  ;;  %s856_s29 = scalar_lea.hbm (!%p173_p10), %s908_s3, %s560_s26 }
  0x12   : > { %s418_s23 = sshll.u32 (!%p173_p10), %s202_s21, 4  ;;  %s860_s15 = scalar_lea.sflag (!%p173_p10), [#allocation3], %s200_s10  ;;  %s851_s23 = int_to_ptr.vmem [resolvable:$true] %s418_s23 }
  0x13   : > { %s675_s30 = scalar_lea.vmem (!%p173_p10), %s851_s23, 512  ;;  %s753_s4 = smov (!%p173_p10), [#allocation2]  }
  0x14   : > { %v668_v0 = vld [vmem:[%s906_s1 + $0x10] sm:$0xff]   ;;  %v669_v1 = vld [vmem:[%s906_s1 + $0x8] sm:$0xff]   ;;  %s919_s28 = smov (!%p204_p11, %s525_s28), 15  ;;  %v670_v2 = vld [vmem:[%s906_s1] sm:$0xff]   ;;  %vm277_vm0 = vcmask 392192   ;;  %p676_p12 = scmp.ne.s32.totalorder %s851_s23, %s675_s30 }
  0x15   : > { %591 = vmatprep.subr.bf16.mxu0 %v668_v0  ;;  %605 = vmatprep.subr.bf16.mxu1 %v668_v0  ;;  %s526_s6 = sshll.u32 %s919_s28, 2  ;;  %v527_v7 = vld [vmem:[%s907_s2] ss:$0 sm:$0xff]  ;;  %s679_s5 = sshll.u32 %s753_s4, 4  ;;  %s680_s5 = int_to_ptr.vmem [resolvable:$false] %s679_s5 }
  0x16   : > { %592 = vmatpush3.bf16.msra.mxu0 %v668_v0  ;;  %608 = vmatpush3.bf16.msra.mxu1 %v668_v0  ;;  %s207_s9 = scalar_lea.vmem %s905_s0, %s526_s6  ;;  %p677_p13 = pnand %p676_p12, %p816_p4 }
  0x17   : > { %593 = vmatprep.subr.bf16.mxu0 %v669_v1  ;;  %606 = vmatprep.subr.bf16.mxu1 %v669_v1  ;;  %v671_v3 = vld [vmem:[%s207_s9] sm:$0xff]   ;;  %v672_v4 = vld [vmem:[%s207_s9 + $0x10] sm:$0xff]   ;;  %v673_v5 = vld [vmem:[%s207_s9 + $0x8] sm:$0xff]   ;;  %s681_s6 = scalar_lea.vmem %s680_s5, 1024  ;;  %p682_p1 = scmp.lt.s32.totalorder %s851_s23, %s680_s5 }
  0x18   : > { %597 = vmatprep.mubr.msk.bf16.mxu0 %vm277_vm0, %v671_v3  ;;  %601 = vmatprep.mubr.msk.bf16.mxu1 %vm277_vm0, %v672_v4  ;;  %v674_v6 = vld [vmem:[%s207_s9 + $0x18] sm:$0xff]   ;;  %p678_p0 = pneg %p677_p13  ;;  %p683_p2 = scmp.lt.s32.totalorder %s681_s6, %s675_s30 }
  0x1a   : > { %594 = vmatpush3.bf16.msra.mxu0 %v669_v1  ;;  %609 = vmatpush3.bf16.msra.mxu1 %v669_v1  ;;  %p684_p3 = por %p683_p2, %p682_p1 }
  0x1b   : > { %595 = vmatprep.subr.bf16.mxu0 %v670_v2  ;;  %607 = vmatprep.subr.bf16.mxu1 %v670_v2 }
  0x1c   : > { %p685_p5 = pnand %p684_p3, %p678_p0 }
  0x1e   : > { %596 = vmatpush3.bf16.msra.mxu0 %v670_v2  ;;  %610 = vmatpush3.bf16.msra.mxu1 %v670_v2 }
  0x21   : > { %598 = vmatmul.mubr.msk.bf16.vlgmr.msra.gmra.mxu0 %vm277_vm0, %v673_v5  ;;  %602 = vmatmul.mubr.msk.bf16.vlgmr.msra.gmra.mxu1 %vm277_vm0, %v674_v6 }
  0xe1   : > { %v599_v8 = vpop.f32.mrf.mxu0  ;;  %v603_v9 = vpop.f32.mrf.mxu1 }
  0xe2   : > { %v333_v10 = vadd.f32 %v599_v8, %v527_v7  ;;  %v349_v11 = vadd.f32 %v603_v9, %v527_v7 }
  0xe3   : > { %v324_v12 = vpop.f32.mrf.mxu0  ;;  %v340_v13 = vpop.f32.mrf.mxu1 }
  0xe4   : > { %v325_v14 = vadd.f32 %v527_v7, %v324_v12  ;;  %v341_v15 = vadd.f32 %v527_v7, %v340_v13  ;;  %v357_v20 = vmax.f32 %v333_v10, 0.0  ;;  %v361_v21 = vmax.f32 %v349_v11, 0.0 }
  0xe5   : > { %v600_v16 = vpop.f32.mrf.mxu0  ;;  %v604_v17 = vpop.f32.mrf.mxu1 }
  0xe6   : > { %v336_v18 = vadd.f32 %v600_v16, %v527_v7  ;;  %v352_v19 = vadd.f32 %v604_v17, %v527_v7  ;;  %v355_v28 = vmax.f32 %v325_v14, 0.0  ;;  %v359_v29 = vmax.f32 %v341_v15, 0.0 }
  0xe7   : > { %v327_v22 = vpop.f32.mrf.mxu0  ;;  %v343_v23 = vpop.f32.mrf.mxu1 }
  0xe8   : > { %v358_v24 = vmax.f32 %v336_v18, 0.0  ;;  %v362_v25 = vmax.f32 %v352_v19, 0.0  ;;  %v328_v26 = vadd.f32 %v527_v7, %v327_v22  ;;  %v344_v27 = vadd.f32 %v527_v7, %v343_v23 }
  0xea   : > { %v569_v30 = vpack.c.bf16 %v358_v24, %v357_v20  ;;  %v579_v31 = vpack.c.bf16 %v362_v25, %v361_v21  ;;  %v356_v32 = vmax.f32 %v328_v26, 0.0  ;;  %v360_v33 = vmax.f32 %v344_v27, 0.0 }
  0xec   : > { %581 = vst [vmem:[%s202_s21 + $0x8] sm:$0xff] %v569_v30   ;;  %583 = vst [vmem:[%s202_s21 + $0x18] sm:$0xff] %v579_v31   ;;  %v564_v34 = vpack.c.bf16 %v356_v32, %v355_v28  ;;  %v574_v35 = vpack.c.bf16 %v360_v33, %v359_v29 }
  0xee   : > { %565 = vst [vmem:[%s202_s21] sm:$0xff] %v564_v34   ;;  %582 = vst [vmem:[%s202_s21 + $0x10] sm:$0xff] %v574_v35  }
  0xef   : > { %688 = shalt.err (!%p685_p5)
}
  0xf0   : > { %s689_s7 = scalar_lea.hbm %s856_s29, 512  ;;  %s693_s10 = scalar_lea.hbm %s908_s3, 1024 }
  0xf1   : > { %p690_p6 = scmp.ne.s32.totalorder %s856_s29, %s689_s7  ;;  %p694_p10 = scmp.lt.s32.totalorder %s856_s29, %s908_s3 }
  0xf2   : > { %p695_p11 = scmp.lt.s32.totalorder %s693_s10, %s689_s7 }
  0xf3   : > { %p691_p7 = pnand %p690_p6, %p816_p4 }
  0xf4   : > { %p696_p12 = por %p695_p11, %p694_p10 }
  0xf5   : > { %p692_p9 = pneg %p691_p7 }
  0xf7   : > { %p697_p13 = pnand %p696_p12, %p692_p9 }
  0xf9   : > { %700 = shalt.err (!%p697_p13)
}
  0xfa   : > { %s754_s19 = smov 64   ;;  %s755_s21 = smov 4  }
  0xfb   : > { %611 = dma.vmem_to_hbm [thread:$0]  (%p816_p4), %s851_s23, 512, %s856_s29, %s860_s15, %s754_s19, %s754_s19, %s755_s21  }
  0xfc PF: > { %p617_p0 = scmp.ge.s32.totalorder %s751_s17, 2  ;;  %s433_s26 = sand.u32 1, %s731_s12  }
  0xfd   : > { %s434_s27 = scalar_lea.sflag [#allocation3], %s433_s26 }
  0xfe   : > { %p614_p1 = pnand %p617_p0, %p823_p8 }
 0x100   : > { %p615_p2 = pneg %p614_p1 }
 0x102   : > { %726 = dma.done.wait (%p615_p2), %s434_s27, 512  }
 0x103   : > { %728 = vsyncadd (%p615_p2), %s434_s27, 4294966784  ;;  %s16_s17 = sadd.s32 1, %s751_s17   ;;  %s911_s12 = smov %s735_s13 }
 0x104   : > { %p13_p3 = scmp.ge.s32.totalorder %s16_s17, 4   ;;  %s912_s13 = smov %s739_s14 }
 0x105   : > { %s913_s14 = smov %s829_s25  ;;  %s914_s15 = smov %s747_s16 }
 0x106   : > { %s915_s16 = smov %s917_s20  ;;  %15 = sbr.rel (!%p13_p3) target bundleno = 4 (0x4), region = 73 }
 0x10b   :  { %439 = vsyncpa [#allocation3], 1 }
 0x10c   :  { %441 = vsyncpa [#allocation3 + $0x1], 1 }

</bundles_post_ra>
